<compile_context>
chip_gen: v6e
topology: v6e:2x2x1
jax: 0.10.0
libtpu: 0.0.40
codegen_flags: <defaults>
</compile_context>

<pallas_src>
import jax
import jax.numpy as jnp
from jax import lax
from jax.experimental import pallas as pl
from jax.experimental.pallas import tpu as pltpu


def _round_up(x, m):
    return (x + m - 1) // m * m


# ---------------------------------------------------------------------------
# Kernels
# ---------------------------------------------------------------------------
def _make_main_kernel(sys_norm, add_bias):
    """K-tiled  out[i,:] = scale_i * sum_k adj[i, k_tile] @ feat[k_tile, :] (+ bias).

    scale_i is accumulated from the resident adjacency slab itself:
      L1 path : 1 / max(sum_j |a_ij|, 1e-12)   (== F.normalize(adj, p=1, dim=1))
      sym path: rsqrt(sum_j a_ij), inf -> 0    (left D^{-1/2}, torch isinf guard)
    The output block is resident across the K grid axis and is the f32
    accumulator.
    """
    def kernel(*refs):
        if add_bias:
            adj_ref, feat_ref, b_ref, o_ref, rs_ref = refs
        else:
            adj_ref, feat_ref, o_ref, rs_ref = refs
        k = pl.program_id(1)

        @pl.when(k == 0)
        def _init():
            o_ref[...] = jnp.zeros_like(o_ref)
            rs_ref[...] = jnp.zeros_like(rs_ref)

        adj = adj_ref[...]
        adj32 = adj.astype(jnp.float32)
        if sys_norm:
            rs_ref[...] += jnp.sum(adj32, axis=1, keepdims=True)
        else:
            rs_ref[...] += jnp.sum(jnp.abs(adj32), axis=1, keepdims=True)
        o_ref[...] += jnp.dot(adj, feat_ref[...],
                              preferred_element_type=jnp.float32)

        @pl.when(k == pl.num_programs(1) - 1)
        def _finalize():
            if sys_norm:
                d = lax.rsqrt(rs_ref[...])
                scale = jnp.where(jnp.isinf(d), 0.0, d)
            else:
                # one reciprocal per row, then a multiply (not a TM x Dp divide)
                scale = 1.0 / jnp.maximum(rs_ref[...], 1e-12)
            out = o_ref[...] * scale
            if add_bias:
                out = out + b_ref[...]
            o_ref[...] = out

    return kernel


def _dinv_sqrt_kernel(adj_ref, dinv_ref):
    # d^{-1/2} per adjacency row, accumulated over K tiles (output-resident).
    k = pl.program_id(1)

    @pl.when(k == 0)
    def _init():
        dinv_ref[...] = jnp.zeros_like(dinv_ref)

    dinv_ref[...] += jnp.sum(adj_ref[...].astype(jnp.float32),
                             axis=1, keepdims=True)

    @pl.when(k == pl.num_programs(1) - 1)
    def _finalize():
        d = lax.rsqrt(dinv_ref[...])
        dinv_ref[...] = jnp.where(jnp.isinf(d), 0.0, d)


def _xw_kernel(x_ref, w_ref, o_ref):
    o_ref[...] = jnp.dot(x_ref[...], w_ref[...],
                         preferred_element_type=jnp.float32).astype(o_ref.dtype)


def _xw_scaled_kernel(x_ref, w_ref, dinv_ref, o_ref):
    xw = jnp.dot(x_ref[...], w_ref[...], preferred_element_type=jnp.float32)
    o_ref[...] = (xw * dinv_ref[...]).astype(o_ref.dtype)


def _scale_rows_kernel(x_ref, dinv_ref, o_ref):
    o_ref[...] = (x_ref[...] * dinv_ref[...]).astype(o_ref.dtype)


def _post_matmul_kernel(s_ref, w_ref, b_ref, o_ref):
    o_ref[...] = (jnp.dot(s_ref[...], w_ref[...],
                          preferred_element_type=jnp.float32) + b_ref[...])


# ---------------------------------------------------------------------------
# Wrapper
# ---------------------------------------------------------------------------
def _compiler_params(resident_bytes, semantics):
    kwargs = dict(dimension_semantics=semantics)
    # Threshold (12 MiB) is below v5e's 16 MiB scoped default; the cap is
    # generation-aware and leaves 25% headroom for compiler-internal scratch.
    if resident_bytes > 12 * (1 << 20):
        try:
            phys = int(pltpu.get_tpu_info().vmem_capacity_bytes)
        except Exception:              # non-TPU tracing / older runtimes
            phys = 64 * (1 << 20)      # v7x per-TC physical (smallest current)
        cap = (phys * 3) // 4
        kwargs["vmem_limit_bytes"] = int(
            min(max(resident_bytes * 3 // 2, 16 * (1 << 20)), cap))
    return pltpu.CompilerParams(**kwargs)


def message_passing(adjacency, input_feature, weight, bias=None, *,
                    sys_norm=False, matmul_dtype=jnp.float32):
    """Pallas implementation of MessgePsssing.forward.

    adjacency:     [N, N] f32
    input_feature: [N, D_in] f32
    weight:        [D_in, D_out] f32
    bias:          [D_out] f32 or None
    matmul_dtype:  dtype used to stream adjacency / features through the big
                   matmul (f32 for exact parity; bf16 halves HBM traffic).
    """
    adjacency = adjacency.astype(jnp.float32)
    x = input_feature.astype(jnp.float32)
    w = weight.astype(jnp.float32)
    N = adjacency.shape[0]
    D_in, D_out = w.shape
    if bias is None:
        bias = jnp.zeros((D_out,), jnp.float32)
    bias = bias.astype(jnp.float32)

    feat_item = jnp.dtype(matmul_dtype).itemsize

    # ------------------------------ tiling ---------------------------------
    TM_TARGET, TK_TARGET = 256, 1024
    TM = N if N <= TM_TARGET else TM_TARGET
    Np_r = _round_up(N, TM)
    if N <= TK_TARGET:
        TK, Np_c = N, N
    else:
        TK, Np_c = TK_TARGET, _round_up(N, TK_TARGET)
    n_i, n_k = Np_r // TM, Np_c // TK

    # Zero-padded adjacency (no-op when N divides the tiles); padded rows get
    # zero degree / zero L1 norm and are sliced off at the end.
    if (Np_r, Np_c) != (N, N):
        adj_p = jnp.pad(adjacency, ((0, Np_r - N), (0, Np_c - N)))
    else:
        adj_p = adjacency
    adj_mm = adj_p.astype(matmul_dtype)
    adj_item = jnp.dtype(matmul_dtype).itemsize

    # Matmul order: contract the smaller of D_in / D_out first.
    order_xw_first = D_out <= D_in
    if order_xw_first:
        Dp = _round_up(D_out, 128)          # lane-dense padded feature width
        Dp_out = Dp
        w_p = jnp.pad(w, ((0, 0), (0, Dp - D_out))) if Dp != D_out else w
        bias_p = jnp.pad(bias, (0, Dp - D_out)) if Dp != D_out else bias
    else:
        Dp = _round_up(D_in, 128)
        Dp_out = _round_up(D_out, 128)
        if Dp != D_in:
            x = jnp.pad(x, ((0, 0), (0, Dp - D_in)))
        w_p = jnp.pad(w, ((0, Dp - D_in), (0, Dp_out - D_out)))
        bias_p = jnp.pad(bias, (0, Dp_out - D_out)) if Dp_out != D_out else bias

    # Feature rows padded to the adjacency's column padding.
    x_p = jnp.pad(x, ((0, Np_c - N), (0, 0))) if Np_c != N else x

    # Independent, larger row tile for the small feature/degree passes.
    D_feat_in = D_in if order_xw_first else Dp
    def _feat_bytes(t):
        return (4 * 2 * t * D_feat_in + 4 * 2 * D_feat_in * Dp
                + feat_item * 2 * t * Dp + 4 * 2 * t * 128)
    TM_F = TK
    while _feat_bytes(TM_F) > 8 * (1 << 20) and TM_F % 16 == 0 and TM_F > 32:
        TM_F //= 2
    n_f = Np_c // TM_F

    # --------------------------- degrees (sym) ------------------------------
    dinv_c = None
    if sys_norm:
        deg_bytes = adj_item * 2 * TM * TK + 4 * 2 * TM * 128
        dinv_r = pl.pallas_call(
            _dinv_sqrt_kernel,
            out_shape=jax.ShapeDtypeStruct((Np_r, 1), jnp.float32),
            grid_spec=pltpu.PrefetchScalarGridSpec(
                num_scalar_prefetch=0, grid=(n_i, n_k),
                in_specs=[pl.BlockSpec((TM, TK), lambda i, k: (i, k))],
                out_specs=pl.BlockSpec((TM, 1), lambda i, k: (i, 0))),
            compiler_params=_compiler_params(deg_bytes, ("parallel", "arbitrary")),
        )(adj_mm)
        # dinv aligned to feature rows (= adjacency columns)
        if Np_c <= Np_r:
            dinv_c = dinv_r[:Np_c]
        else:
            dinv_c = jnp.pad(dinv_r, ((0, Np_c - Np_r), (0, 0)))

    # ----------------------------- feature pass -----------------------------
    if order_xw_first:
        feat_specs = [pl.BlockSpec((TM_F, D_in), lambda i: (i, 0)),
                      pl.BlockSpec((D_in, Dp), lambda i: (0, 0))]
        feat_args = [x_p, w_p]
        feat_kernel = _xw_kernel
        if sys_norm:
            feat_specs.append(pl.BlockSpec((TM_F, 1), lambda i: (i, 0)))
            feat_args.append(dinv_c)
            feat_kernel = _xw_scaled_kernel
        feat = pl.pallas_call(
            feat_kernel,
            out_shape=jax.ShapeDtypeStruct((Np_c, Dp), matmul_dtype),
            grid_spec=pltpu.PrefetchScalarGridSpec(
                num_scalar_prefetch=0, grid=(n_f,),
                in_specs=feat_specs,
                out_specs=pl.BlockSpec((TM_F, Dp), lambda i: (i, 0))),
            compiler_params=_compiler_params(_feat_bytes(TM_F), ("parallel",)),
        )(*feat_args)
    else:
        if sys_norm:
            feat = pl.pallas_call(
                _scale_rows_kernel,
                out_shape=jax.ShapeDtypeStruct((Np_c, Dp), matmul_dtype),
                grid_spec=pltpu.PrefetchScalarGridSpec(
                    num_scalar_prefetch=0, grid=(n_f,),
                    in_specs=[pl.BlockSpec((TM_F, Dp), lambda i: (i, 0)),
                              pl.BlockSpec((TM_F, 1), lambda i: (i, 0))],
                    out_specs=pl.BlockSpec((TM_F, Dp), lambda i: (i, 0))),
                compiler_params=_compiler_params(_feat_bytes(TM_F), ("parallel",)),
            )(x_p, dinv_c)
        else:
            feat = x_p.astype(matmul_dtype)

    # ---------------------- dominant K-tiled matmul -------------------------
    add_bias = order_xw_first
    main_kernel = _make_main_kernel(sys_norm, add_bias)
    main_bytes = (adj_item * 2 * TM * TK + feat_item * 2 * TK * Dp
                  + 4 * 2 * TM * Dp + 4 * 2 * Dp + 4 * TM * 128)
    cost_main = pl.CostEstimate(
        flops=int(2 * Np_r * Np_c * Dp),
        transcendentals=int(Np_r if sys_norm else 0),
        bytes_accessed=int(adj_item * Np_r * Np_c
                           + feat_item * Np_c * Dp * n_i + 4 * Np_r * Dp),
    )
    in_specs = [pl.BlockSpec((TM, TK), lambda i, k: (i, k)),
                pl.BlockSpec((TK, Dp), lambda i, k: (k, 0))]
    main_args = [adj_mm, feat]
    if add_bias:
        in_specs.append(pl.BlockSpec((1, Dp), lambda i, k: (0, 0)))
        main_args.append(bias_p.reshape(1, Dp))

    s = pl.pallas_call(
        main_kernel,
        out_shape=jax.ShapeDtypeStruct((Np_r, Dp), jnp.float32),
        grid_spec=pltpu.PrefetchScalarGridSpec(
            num_scalar_prefetch=0, grid=(n_i, n_k),
            in_specs=in_specs,
            out_specs=pl.BlockSpec((TM, Dp), lambda i, k: (i, 0)),
            scratch_shapes=[pltpu.VMEM((TM, 1), jnp.float32)]),
        compiler_params=_compiler_params(main_bytes, ("parallel", "arbitrary")),
        cost_estimate=cost_main,
    )(*main_args)

    # ---------------------------- finalize ----------------------------------
    if order_xw_first:
        return s[:N, :D_out]

    # aggregate-first order: out = s @ w + bias (own, larger row tile)
    TM_P = TM
    for cand in (2048, 1024, 512):
        if (Np_r % cand == 0 and
                4 * (2 * cand * Dp + 2 * Dp * Dp_out + 2 * cand * Dp_out)
                <= 8 * (1 << 20)):
            TM_P = cand
            break
    post_bytes = 4 * (2 * TM_P * Dp + 2 * Dp * Dp_out
                      + 2 * TM_P * Dp_out + 2 * Dp_out)
    out_p = pl.pallas_call(
        _post_matmul_kernel,
        out_shape=jax.ShapeDtypeStruct((Np_r, Dp_out), jnp.float32),
        grid_spec=pltpu.PrefetchScalarGridSpec(
            num_scalar_prefetch=0, grid=(Np_r // TM_P,),
            in_specs=[pl.BlockSpec((TM_P, Dp), lambda i: (i, 0)),
                      pl.BlockSpec((Dp, Dp_out), lambda i: (0, 0)),
                      pl.BlockSpec((1, Dp_out), lambda i: (0, 0))],
            out_specs=pl.BlockSpec((TM_P, Dp_out), lambda i: (i, 0))),
        compiler_params=_compiler_params(post_bytes, ("parallel",)),
    )(s, w_p, bias_p.reshape(1, Dp_out))
    return out_p[:N, :D_out]


# ---------------------------------------------------------------------------
# Deterministic parameter init (mirrors reset_parameters)
# ---------------------------------------------------------------------------
def init_params(key, input_dim, output_dim, use_bias=True):
    # xavier_normal_ with gain=1: std = sqrt(2 / (fan_in + fan_out))
    std = (2.0 / (input_dim + output_dim)) ** 0.5
    weight = std * jax.random.normal(key, (input_dim, output_dim),
                                     dtype=jnp.float32)
    bias = jnp.zeros((output_dim,), dtype=jnp.float32) if use_bias else None
    return weight, bias


if __name__ == "__main__":
    def reference(adjacency, x, w, b, sys_norm):
        if sys_norm:
            dinv = jnp.power(jnp.sum(adjacency, axis=1), -0.5)
            dinv = jnp.where(jnp.isinf(dinv), 0.0, dinv)
            adj_n = dinv[:, None] * adjacency * dinv[None, :]
        else:
            row = jnp.maximum(jnp.sum(jnp.abs(adjacency), axis=1,
                                      keepdims=True), 1e-12)
            adj_n = adjacency / row
        return adj_n @ x @ w + b

    N = 16
    key = jax.random.PRNGKey(0)
    k_adj, k_x, k_w1, k_w2 = jax.random.split(key, 4)
    adjacency = jax.random.uniform(k_adj, (N, N), dtype=jnp.float32)

    # D_out <= D_in  ->  contract-features-first order.
    D_IN, D_OUT = 32, 32
    x = jax.random.normal(k_x, (N, D_IN), dtype=jnp.float32)
    w, b = init_params(k_w1, D_IN, D_OUT, use_bias=True)
    for sn in (False, True):
        out = jax.block_until_ready(
            message_passing(adjacency, x, w, b, sys_norm=sn))
        ref = reference(adjacency, x, w, b, sn)
        assert out.shape == (N, D_OUT)
        assert jnp.allclose(out, ref, atol=1e-4, rtol=1e-4), \
            float(jnp.max(jnp.abs(out - ref)))

    # D_in < D_out  ->  aggregate-first order (adj @ x first, then @ w).
    D_IN2, D_OUT2 = 16, 48
    x2 = jax.random.normal(k_x, (N, D_IN2), dtype=jnp.float32)
    w2, b2 = init_params(k_w2, D_IN2, D_OUT2, use_bias=True)
    for sn in (False, True):
        out = jax.block_until_ready(
            message_passing(adjacency, x2, w2, b2, sys_norm=sn))
        ref = reference(adjacency, x2, w2, b2, sn)
        assert out.shape == (N, D_OUT2)
        assert jnp.allclose(out, ref, atol=1e-4, rtol=1e-4), \
            float(jnp.max(jnp.abs(out - ref)))

    # bf16 adjacency / feature stream (HBM-bound perf lever); loose tolerance.
    out_bf = jax.block_until_ready(
        message_passing(adjacency, x, w, b, sys_norm=False,
                        matmul_dtype=jnp.bfloat16))
    ref = reference(adjacency, x, w, b, False)
    assert jnp.allclose(out_bf, ref, atol=5e-2, rtol=5e-2), \
        float(jnp.max(jnp.abs(out_bf - ref)))

    print("KERNEL_OK")
</pallas_src>

<mosaic_0001>
module attributes {stable_mosaic.version = 11 : i64} {
  func.func @_xw_kernel(%arg0: i32, %arg1: memref<16x32xf32, #tpu.memory_space<vmem>>, %arg2: memref<32x128xf32, #tpu.memory_space<vmem>>, %arg3: memref<16x128xf32, #tpu.memory_space<vmem>>) attributes {dimension_semantics = [#tpu.dimension_semantics<parallel>], iteration_bounds = array<i64: 1>, scalar_prefetch = 0 : i64, scratch_operands = 0 : i64, tpu.core_type = #tpu.core_type<tc>, window_params = [{transform_indices = @transform_0, window_bounds = array<i64: 16, 32>}, {pipeline_mode = #tpu.pipeline_mode<synchronous>, transform_indices = @transform_1, window_bounds = array<i64: 32, 128>}, {transform_indices = @transform_2, window_bounds = array<i64: 16, 128>}]} {
    %c0 = arith.constant 0 : index
    %c0_0 = arith.constant 0 : index
    %0 = vector.load %arg1[%c0, %c0_0] : memref<16x32xf32, #tpu.memory_space<vmem>>, vector<16x32xf32>
    %c0_1 = arith.constant 0 : index
    %c0_2 = arith.constant 0 : index
    %1 = vector.load %arg2[%c0_1, %c0_2] : memref<32x128xf32, #tpu.memory_space<vmem>>, vector<32x128xf32>
    %cst = arith.constant dense<0.000000e+00> : vector<16x128xf32>
    %2 = tpu.matmul %0, %1, %cst {dimension_numbers = #tpu.dot_dimension_numbers<[1], [0], [0], [1], [0, 0, 1, 1], [], []>} : vector<16x32xf32>, vector<32x128xf32>, vector<16x128xf32> -> vector<16x128xf32>
    %c0_3 = arith.constant 0 : index
    %c0_4 = arith.constant 0 : index
    %3 = vector.load %arg3[%c0_3, %c0_4] : memref<16x128xf32, #tpu.memory_space<vmem>>, vector<16x128xf32>
    tpu.vector_store %arg3[%c0_3, %c0_4], %2 {strides = array<i32>} : memref<16x128xf32, #tpu.memory_space<vmem>>, vector<16x128xf32>,
    return
  }
  func.func @transform_0(%arg0: i32) -> (i32, i32) {
    %c0_i32 = arith.constant 0 : i32
    %c0_i32_0 = arith.constant 0 : i32
    return %arg0, %c0_i32 : i32, i32
  }
  func.func @transform_1(%arg0: i32) -> (i32, i32) {
    %c0_i32 = arith.constant 0 : i32
    %c0_i32_0 = arith.constant 0 : i32
    %c0_i32_1 = arith.constant 0 : i32
    return %c0_i32, %c0_i32_0 : i32, i32
  }
  func.func @transform_2(%arg0: i32) -> (i32, i32) {
    %c0_i32 = arith.constant 0 : i32
    %c0_i32_0 = arith.constant 0 : i32
    return %arg0, %c0_i32 : i32, i32
  }
}

</mosaic_0001>

<bundles_post_ra>
// kernel: tpu_custom_call.1
= control target key start
LH: loop header
LB: loop body
LE: loop exit
PB: predicated region body
PF: predicated region fallthrough
CT: control target
= control target key end

     0   :  { %7 = vsyncpa [#allocation3], 0  ;;  %s278_s0 = inlined_call_operand.hbm [shape: f32[16,32], index: 0, kind: input, shape index: {}]   ;;  %s279_s1 = inlined_call_operand.hbm [shape: f32[32,128], index: 1, kind: input, shape index: {}]   ;;  %s280_s2 = inlined_call_operand.hbm [shape: f32[16,128], index: 2, kind: output, shape index: {}]  }
   0x1   :  { %8 = vsyncpa [#allocation6], 0 }
   0x2   :  { %9 = vsyncpa [#allocation4], 0  ;;  %s238_s9 = smov [#allocation2]  }
   0x3   :  { %s15_s10 = sshll.u32 %s238_s9, 4  ;;  %s16_s10 = int_to_ptr.vmem [resolvable:$true] %s15_s10 }
   0x4   :  { %s180_s11 = scalar_lea.vmem %s16_s10, 256  ;;  %p185_p1 = scmp.lt.s32.totalorder %s16_s10, %s16_s10 }
   0x5   :  { %p181_p0 = scmp.ne.s32.totalorder %s16_s10, %s180_s11  ;;  %p186_p2 = scmp.lt.s32.totalorder %s180_s11, %s180_s11 }
   0x7   :  { %p187_p3 = por %p186_p2, %p185_p1 }
   0x9   :  { %p188_p4 = pnand %p187_p3, %p181_p0 }
   0xb   :  { %191 = shalt.err (!%p188_p4)
}
   0xc   :  { %s239_s12 = smov 128   ;;  %s240_s13 = smov 8  }
   0xd   :  { %21 = dma.hbm_to_vmem [thread:$0]  %s278_s0, 256, %s16_s10, [#allocation3], %s239_s12, %s239_s12, %s240_s13  }
   0xe   :  { %s241_s16 = smov [#allocation5]  }
   0xf   :  { %s27_s17 = sshll.u32 %s241_s16, 4  ;;  %s28_s17 = int_to_ptr.vmem [resolvable:$true] %s27_s17 }
  0x10   :  { %s200_s18 = scalar_lea.vmem %s28_s17, 512  ;;  %p205_p6 = scmp.lt.s32.totalorder %s28_s17, %s28_s17 }
  0x11   :  { %p201_p5 = scmp.ne.s32.totalorder %s28_s17, %s200_s18  ;;  %p206_p7 = scmp.lt.s32.totalorder %s200_s18, %s200_s18 }
  0x13   :  { %p207_p8 = por %p206_p7, %p205_p6 }
  0x15   :  { %p208_p9 = pnand %p207_p8, %p201_p5 }
  0x17   :  { %211 = shalt.err (!%p208_p9)
}
  0x18   :  { %33 = dma.hbm_to_vmem [thread:$0]  %s279_s1, 512, %s28_s17, [#allocation6], %s239_s12, %s239_s12, %s240_s13  }
  0x19   :  { %232 = dma.done.wait [#allocation3], 256  }
  0x1a   :  { %233 = vsyncadd [#allocation3], 4294967040 }
  0x1b   :  { %234 = dma.done.wait [#allocation6], 512  }
  0x1c   :  { %235 = vsyncadd [#allocation6], 4294966784  ;;  %vm46_vm0 = vcmask 261120   ;;  %v45_v0 = vld [vmem:[#allocation5 + $0x18] sm:$0xff]  ;;  %v44_v1 = vld [vmem:[#allocation5 + $0x10] sm:$0xff]  ;;  %s242_s0 = smov [#allocation7]  }
  0x1d   :  { %156 = vmatprep.subr.mxu0 %v45_v0  ;;  %v40_v2 = vld [vmem:[#allocation2] sm:$0xff]  ;;  %v43_v3 = vld [vmem:[#allocation5 + $0x8] sm:$0xff]  ;;  %v42_v4 = vld [vmem:[#allocation5] sm:$0xff]  ;;  %s135_s1 = sshll.u32 %s242_s0, 4  ;;  %s136_s1 = int_to_ptr.vmem [resolvable:$true] %s135_s1 }
  0x1e   :  { %157 = vmatpush3.msra.mxu0 %v45_v0  ;;  %164 = vmatprep.mubr.msk.f32.mxu0 %vm46_vm0, %v40_v2  ;;  %v41_v5 = vld [vmem:[#allocation2 + $0x8] sm:$0xff]  ;;  %s212_s21 = scalar_lea.vmem %s136_s1, 256  ;;  %p217_p11 = scmp.lt.s32.totalorder %s136_s1, %s136_s1 }
  0x1f   :  { %158 = vmatprep.subr.mxu0 %v44_v1  ;;  %p213_p10 = scmp.ne.s32.totalorder %s136_s1, %s212_s21  ;;  %p218_p12 = scmp.lt.s32.totalorder %s212_s21, %s212_s21 }
  0x20   :  { %159 = vmatpush3.msra.mxu0 %v44_v1 }
  0x21   :  { %160 = vmatprep.subr.mxu0 %v43_v3  ;;  %p219_p13 = por %p218_p12, %p217_p11 }
  0x22   :  { %161 = vmatpush3.msra.mxu0 %v43_v3 }
  0x23   :  { %162 = vmatprep.subr.mxu0 %v42_v4  ;;  %p220_p0 = pnand %p219_p13, %p213_p10 }
  0x24   :  { %163 = vmatpush3.msra.mxu0 %v42_v4 }
  0x25   :  { %165 = vmatmul.mubr.msk.f32.vlgmr.msra.gmra.mxu0 %vm46_vm0, %v41_v5 }
  0xe5   :  { %v166_v6 = vpop.f32.mrf.mxu0 }
  0xe6   :  { %129 = vst [vmem:[#allocation7 + $0x8] sm:$0xff] %v166_v6 }
  0xe7   :  { %v119_v7 = vpop.f32.mrf.mxu0 }
  0xe8   :  { %128 = vst [vmem:[#allocation7] sm:$0xff] %v119_v7 }
  0xe9   :  { %223 = shalt.err (!%p220_p0)
}
  0xea   :  { %141 = dma.vmem_to_hbm [thread:$0]  %s136_s1, 256, %s280_s2, [#allocation4], %s239_s12, %s239_s12, %s240_s13  }
  0xeb   :  { %236 = dma.done.wait [#allocation4], 256  }
  0xec   :  { %237 = vsyncadd [#allocation4], 4294967040 }
  0xed   :  { %145 = vsyncpa [#allocation3], 1 }
  0xee   :  { %146 = vsyncpa [#allocation6], 1 }
  0xef   :  { %147 = vsyncpa [#allocation4], 1 }

</bundles_post_ra>
